<compile_context>
chip_gen: v6e
topology: v6e:2x2x1
jax: 0.10.0
libtpu: 0.0.40
codegen_flags: <defaults>
</compile_context>

<pallas_src>
import jax
import jax.numpy as jnp
from jax.experimental import pallas as pl
from jax.experimental.pallas import tpu as pltpu

NUM_EMBEDDINGS = 500  # nn.Embedding(500, num_pos_feats)

# Output double-buffer budget: 2 x b_tile x (L*D) x itemsize must stay under
# this.  24 MiB output + tiny resident input slab fits comfortably inside the
# 32 MiB scoped-VMEM limit we request below on every generation
# (v5e/v6e: 128 MiB physical, v7x: 64 MiB physical per TC).
_VMEM_OUT_BUDGET_BYTES = 24 * 1024 * 1024
_VMEM_LIMIT_BYTES = 32 * 1024 * 1024


def _pos_embed_kernel(row_ref, o_ref):
    # row_ref: (1, L*D) lane-dense slice of the learned table (constant
    #          index_map -> stays resident in VMEM across grid steps).
    # o_ref:   (B_TILE, L*D) lane-dense output slab for the current batch tile.
    # Sublane broadcast + unmasked full-lane stores; store-slot bound.
    o_ref[...] = jnp.broadcast_to(row_ref[...], o_ref.shape)


def _choose_batch_tile(b, row_bytes, itemsize):
    """Pick how many batch rows to write per grid step."""
    fit = max(1, _VMEM_OUT_BUDGET_BYTES // (2 * row_bytes))
    if fit >= b:
        # Full-extent block along batch: always legal for the (8, 128) rule.
        return b
    # Partial batch tiling: second-last block dim must respect the sublane
    # packing granularity (8 for f32, 16 for bf16, 32 for int8).
    sub = 8 * max(1, 4 // max(1, itemsize))
    return max(sub, (fit // sub) * sub)


def position_embedding_learned(x, embed_weight):
    """Pallas equivalent of PositionEmbeddingLearned.forward.

    x:            array of shape (B, L, D) (only the shape matters)
    embed_weight: learned table of shape (500, num_pos_feats)
    returns:      (B, L, D) positional embeddings
    """
    b, l, dim = x.shape[-3], x.shape[-2], x.shape[-1]
    num_pos_feats = embed_weight.shape[1]
    assert dim == num_pos_feats and l <= NUM_EMBEDDINGS, (
        f"the size of the pos embedding is not correct, {l} vs {NUM_EMBEDDINGS}"
    )

    f = l * num_pos_feats
    # Wrapper-side layout plumbing: slice only the rows that are read and fold
    # them into a single lane-dense row so kernel stores are unmasked.
    row = embed_weight[:l].reshape(1, f)

    itemsize = jnp.dtype(embed_weight.dtype).itemsize
    row_bytes = f * itemsize
    b_tile = _choose_batch_tile(b, row_bytes, itemsize)
    grid = (pl.cdiv(b, b_tile),)

    out_flat = pl.pallas_call(
        _pos_embed_kernel,
        out_shape=jax.ShapeDtypeStruct((b, f), embed_weight.dtype),
        grid_spec=pltpu.PrefetchScalarGridSpec(
            num_scalar_prefetch=0,
            grid=grid,
            in_specs=[
                # Tiny (1, L*D) slab; constant index_map -> the same block is
                # reused for every grid step (no re-DMA of the table slice).
                pl.BlockSpec((1, f), lambda i: (0, 0)),
            ],
            out_specs=pl.BlockSpec((b_tile, f), lambda i: (i, 0)),
        ),
        compiler_params=pltpu.CompilerParams(
            # No-op on single-TC v5e/v6e; shards batch tiles across the two
            # TensorCores on v7x.
            dimension_semantics=("parallel",),
            vmem_limit_bytes=_VMEM_LIMIT_BYTES,
        ),
    )(row)

    return out_flat.reshape(b, l, num_pos_feats)


if __name__ == "__main__":
    key = jax.random.PRNGKey(0)
    k_w, k_x = jax.random.split(key)

    # Small shapes consistent with the forward: x is (B, L, D), D == num_pos_feats.
    batch, seq_len, num_pos_feats = 2, 8, 32

    # nn.init.uniform_ on the embedding weight -> U[0, 1), deterministic here.
    embed_weight = jax.random.uniform(
        k_w, (NUM_EMBEDDINGS, num_pos_feats), dtype=jnp.float32
    )
    x = jax.random.normal(k_x, (batch, seq_len, num_pos_feats), dtype=jnp.float32)

    pos = position_embedding_learned(x, embed_weight)
    pos = jax.block_until_ready(pos)

    # Reference check in plain JAX (same semantics as the PyTorch forward).
    ref = jnp.broadcast_to(
        embed_weight[:seq_len][None, :, :], (batch, seq_len, num_pos_feats)
    )
    assert pos.shape == (batch, seq_len, num_pos_feats)
    assert pos.dtype == jnp.float32
    assert jnp.allclose(pos, ref)

    print("KERNEL_OK")
</pallas_src>

<mosaic_0001>
module attributes {stable_mosaic.version = 11 : i64} {
  func.func @_pos_embed_kernel(%arg0: i32, %arg1: memref<1x256xf32, #tpu.memory_space<vmem>>, %arg2: memref<2x256xf32, #tpu.memory_space<vmem>>) attributes {dimension_semantics = [#tpu.dimension_semantics<parallel>], iteration_bounds = array<i64: 1>, scalar_prefetch = 0 : i64, scratch_operands = 0 : i64, tpu.core_type = #tpu.core_type<tc>, window_params = [{pipeline_mode = #tpu.pipeline_mode<synchronous>, transform_indices = @transform_0, window_bounds = array<i64: 1, 256>}, {transform_indices = @transform_1, window_bounds = array<i64: 2, 256>}]} {
    %c0 = arith.constant 0 : index
    %c0_0 = arith.constant 0 : index
    %0 = vector.load %arg1[%c0, %c0_0] : memref<1x256xf32, #tpu.memory_space<vmem>>, vector<1x256xf32>
    %1 = vector.shape_cast %0 : vector<1x256xf32> to vector<1x256xf32>
    %2 = vector.broadcast %1 : vector<1x256xf32> to vector<2x256xf32>
    %c0_1 = arith.constant 0 : index
    %c0_2 = arith.constant 0 : index
    %3 = vector.load %arg2[%c0_1, %c0_2] : memref<2x256xf32, #tpu.memory_space<vmem>>, vector<2x256xf32>
    tpu.vector_store %arg2[%c0_1, %c0_2], %2 {strides = array<i32>} : memref<2x256xf32, #tpu.memory_space<vmem>>, vector<2x256xf32>,
    return
  }
  func.func @transform_0(%arg0: i32) -> (i32, i32) {
    %c0_i32 = arith.constant 0 : i32
    %c0_i32_0 = arith.constant 0 : i32
    %c0_i32_1 = arith.constant 0 : i32
    return %c0_i32, %c0_i32_0 : i32, i32
  }
  func.func @transform_1(%arg0: i32) -> (i32, i32) {
    %c0_i32 = arith.constant 0 : i32
    %c0_i32_0 = arith.constant 0 : i32
    return %arg0, %c0_i32 : i32, i32
  }
}

</mosaic_0001>

<bundles_post_ra>
// kernel: tpu_custom_call.1
= control target key start
LH: loop header
LB: loop body
LE: loop exit
PB: predicated region body
PF: predicated region fallthrough
CT: control target
= control target key end

     0   :  { %6 = vsyncpa [#allocation3], 0  ;;  %s121_s0 = inlined_call_operand.hbm [shape: f32[1,256], index: 0, kind: input, shape index: {}]   ;;  %s122_s1 = inlined_call_operand.hbm [shape: f32[2,256], index: 1, kind: output, shape index: {}]  }
   0x1   :  { %7 = vsyncpa [#allocation4], 0  ;;  %s103_s6 = smov [#allocation2]  }
   0x2   :  { %s14_s7 = sshll.u32 %s103_s6, 4  ;;  %s15_s7 = int_to_ptr.vmem [resolvable:$true] %s14_s7 }
   0x3   :  { %s67_s8 = scalar_lea.vmem %s15_s7, 32  ;;  %p72_p1 = scmp.lt.s32.totalorder %s15_s7, %s15_s7 }
   0x4   :  { %p68_p0 = scmp.ne.s32.totalorder %s15_s7, %s67_s8  ;;  %p73_p2 = scmp.lt.s32.totalorder %s67_s8, %s67_s8 }
   0x6   :  { %p74_p3 = por %p73_p2, %p72_p1 }
   0x8   :  { %p75_p4 = pnand %p74_p3, %p68_p0 }
   0xa   :  { %78 = shalt.err (!%p75_p4)
}
   0xb   :  { %17 = dma.hbm_to_vmem [thread:$0]  %s121_s0, 32, %s15_s7, [#allocation3]  }
   0xc   :  { %99 = dma.done.wait [#allocation3], 32  }
   0xd   :  { %100 = vsyncadd [#allocation3], 4294967264  ;;  %v23_v0 = vlaneseq  ;;  %v21_v4 = vld [vmem:[#allocation2] sm:$0x3]  ;;  %s104_s11 = smov [#allocation5]  }
   0xe   :  { %s47_s12 = sshll.u32 %s104_s11, 4  ;;  %s48_s12 = int_to_ptr.vmem [resolvable:$true] %s47_s12 }
   0xf   :  { %v24_v1 = vshrl.u32 %v23_v0, 7  ;;  %s79_s13 = scalar_lea.vmem %s48_s12, 64  ;;  %p84_p6 = scmp.lt.s32.totalorder %s48_s12, %s48_s12 }
  0x10   :  { %p80_p5 = scmp.ne.s32.totalorder %s48_s12, %s79_s13  ;;  %p85_p7 = scmp.lt.s32.totalorder %s79_s13, %s79_s13 }
  0x11   :  { %v25_v2 = vsub.s32 0, %v24_v1  ;;  %v29_v3 = vsub.s32 1, %v24_v1 }
  0x12   :  { %p86_p8 = por %p85_p7, %p84_p6 }
  0x13   :  { %v26_v5 = vrot.slane %v21_v4, %v25_v2  ;;  %v30_v6 = vrot.slane %v21_v4, %v29_v3 }
  0x14   :  { %p87_p9 = pnand %p86_p8, %p80_p5 }
  0x15   :  { %v31_v7 = vcombine.low %v26_v5, %v30_v6 }
  0x17   :  { %56 = vst.sshfl [vmem:[#allocation5] sm:$0x33 pattern:$0x76325410] %v31_v7 }
  0x18   :  { %90 = shalt.err (!%p87_p9)
}
  0x19   :  { %50 = dma.vmem_to_hbm [thread:$0]  %s48_s12, 64, %s122_s1, [#allocation4]  }
  0x1a   :  { %101 = dma.done.wait [#allocation4], 64  }
  0x1b   :  { %102 = vsyncadd [#allocation4], 4294967232 }
  0x1c   :  { %54 = vsyncpa [#allocation3], 1 }
  0x1d   :  { %55 = vsyncpa [#allocation4], 1 }

</bundles_post_ra>
